<compile_context>
chip_gen: v5e
topology: v5e:2x2
jax: 0.10.0
libtpu: 0.0.40
codegen_flags: <defaults>
</compile_context>

<pallas_src>
import functools

import jax
import jax.numpy as jnp
from jax.experimental import pallas as pl
from jax.experimental.pallas import tpu as pltpu


def _round_up(n, m):
    return ((n + m - 1) // m) * m


def _lane_pad(d):
    """128-multiple padding; prefer 256 alignment (v6e/v7x MXU width) when nearly free."""
    p128 = _round_up(d, 128)
    p256 = _round_up(d, 256)
    return p256 if (p256 - p128) <= p128 // 8 else p128


def _vmem_usable_bytes():
    """~85% of this chip's per-core VMEM (leaves headroom for compiler-internal scratch)."""
    cap = 64 * 1024 * 1024  # conservative default = v7x per-TensorCore VMEM
    try:
        cap = int(pltpu.get_tpu_info().vmem_capacity_bytes)
    except Exception:
        pass
    return int(cap * 0.85)


def _ffn_kernel(x_ref, w1_ref, b1_ref, w2_ref, b2_ref, gamma_ref, beta_ref,
                o_ref, acc_ref, *, eps, d_real):
    """One (tm, d_in_p) row tile; grid axis 1 sweeps the (padded) hidden dimension."""
    j = pl.program_id(1)

    @pl.when(j == 0)
    def _():
        acc_ref[...] = jnp.zeros_like(acc_ref)

    # ---- matmul 1: x @ w1 chunk (+ bias, ReLU) -- native/weight dtype on the MXU, f32 acc.
    x = x_ref[...]
    xm = x if x.dtype == w1_ref.dtype else x.astype(w1_ref.dtype)
    h = jnp.dot(xm, w1_ref[...], preferred_element_type=jnp.float32)
    h = jnp.maximum(h + b1_ref[...].astype(jnp.float32), 0.0)

    # ---- matmul 2: accumulate relu(h) @ w2 chunk into the f32 accumulator.
    acc_ref[...] += jnp.dot(h.astype(w2_ref.dtype), w2_ref[...],
                            preferred_element_type=jnp.float32)

    # ---- epilogue on the last hidden chunk: bias, residual, LayerNorm.
    @pl.when(j == pl.num_programs(1) - 1)
    def _():
        z = acc_ref[...] + b2_ref[...].astype(jnp.float32) + x.astype(jnp.float32)
        # TODO(synk): dropout omitted (module in eval mode -> identity).
        d_pad = z.shape[-1]
        inv_n = jnp.float32(1.0 / d_real)
        mean = jnp.sum(z, axis=-1, keepdims=True) * inv_n   # padded cols of z are exactly 0
        cen = z - mean
        if d_real != d_pad:
            col = jax.lax.broadcasted_iota(jnp.int32, (1, d_pad), 1)
            cen = cen * (col < d_real).astype(jnp.float32)   # (1, d_pad) row mask, broadcast
        var = jnp.sum(cen * cen, axis=-1, keepdims=True) * inv_n
        zn = cen * jax.lax.rsqrt(var + eps)
        o_ref[...] = (zn * gamma_ref[...].astype(jnp.float32)
                      + beta_ref[...].astype(jnp.float32)).astype(o_ref.dtype)


def _plan_tiles(rows, d_in, d_hid, x_itemsize, w_itemsize, *, tm_req, max_hidden_tile,
                single_buffer_consts, vmem_usable, hidden_chunks):
    lane = 128
    sub = {4: 8, 2: 16, 1: 32}.get(x_itemsize, 8)
    d_in_p = _lane_pad(d_in)

    def w_chunk_bytes(th_, bufs):
        return bufs * 2 * d_in_p * th_ * w_itemsize      # w1 chunk + w2 chunk

    if hidden_chunks is not None:                        # test / tuning override
        n_chunks = max(1, int(hidden_chunks))
        th = _round_up(pl.cdiv(d_hid, n_chunks), lane)
        w_bufs = 1 if (single_buffer_consts and n_chunks == 1) else 2
    else:
        th = _lane_pad(d_hid)
        n_chunks = 1
        w_bufs = 1 if single_buffer_consts else 2
        if w_chunk_bytes(th, w_bufs) > vmem_usable // 2:
            # Weights don't fit resident: stream them, tiling d_hid with <128-col padding.
            w_bufs = 2
            n_chunks = pl.cdiv(d_hid, max_hidden_tile)
            th = _round_up(pl.cdiv(d_hid, n_chunks), lane)
            while th > lane and w_chunk_bytes(th, w_bufs) > vmem_usable // 2:
                n_chunks += 1
                th = _round_up(pl.cdiv(d_hid, n_chunks), lane)
    d_hid_p = n_chunks * th
    w_vmem = w_chunk_bytes(th, w_bufs)

    # Small constant operands (b1 chunk, b2, gamma, beta) -- sublane-padded f32 upper bound.
    small_bytes = 2 * (8 * th + 3 * 8 * d_in_p) * 4

    # Per-row VMEM cost: double-buffered x/out tiles, f32 accumulator scratch, f32 ReLU
    # intermediate, and the epilogue f32 temporaries (z / cen / zn).
    per_row = 4 * d_in_p * x_itemsize + d_in_p * 4 + th * 4 + 3 * d_in_p * 4

    avail = max(vmem_usable - w_vmem - small_bytes, per_row * sub)
    tm_cap = max(sub, (avail // per_row) // sub * sub)

    rows_p0 = _round_up(rows, sub)
    tm_eff = max(sub, min(_round_up(tm_req, sub), tm_cap, rows_p0))
    if rows > sub and pl.cdiv(rows_p0, tm_eff) < 2:
        # Give v7x's two TensorCores (the "parallel" row axis) at least 2 row tiles.
        tm_eff = max(sub, _round_up(pl.cdiv(rows, 2), sub))
    rows_p = _round_up(rows, tm_eff)

    budget = w_vmem + tm_eff * per_row + small_bytes
    vmem_limit = min(max(int(budget * 1.25), 16 * 1024 * 1024), vmem_usable)

    return dict(d_in_p=d_in_p, th=th, n_chunks=n_chunks, d_hid_p=d_hid_p,
                tm=tm_eff, rows_p=rows_p, vmem_limit=vmem_limit)


def positionwise_feed_forward(x, w1, b1, w2, b2, gamma, beta, *,
                              eps=1e-5, tm=512, max_hidden_tile=2048,
                              matmul_dtype=None, hidden_chunks=None):
    """x: (B, L, d_in); w1: (d_in, d_hid); w2: (d_hid, d_in). Returns (B, L, d_in)."""
    B, L, d_in = x.shape
    d_hid = w1.shape[1]
    rows = B * L

    if matmul_dtype is not None:
        # Accuracy-dependent option: bf16 weights halve HBM traffic / VMEM, f32 acc kept.
        w1 = w1.astype(matmul_dtype)
        w2 = w2.astype(matmul_dtype)

    vmem_detected = _vmem_usable_bytes()

    def run(single_buffer, vmem_usable):
        plan = _plan_tiles(rows, d_in, d_hid, x.dtype.itemsize, w1.dtype.itemsize,
                           tm_req=tm, max_hidden_tile=max_hidden_tile,
                           single_buffer_consts=single_buffer,
                           vmem_usable=vmem_usable, hidden_chunks=hidden_chunks)
        d_in_p, th = plan["d_in_p"], plan["th"]
        n_chunks, d_hid_p = plan["n_chunks"], plan["d_hid_p"]
        tm_eff, rows_p = plan["tm"], plan["rows_p"]

        # Zero-pad everything (zeros are inert through matmul/ReLU/residual; LN masks them).
        x2 = jnp.pad(x.reshape(rows, d_in), ((0, rows_p - rows), (0, d_in_p - d_in)))
        w1_p = jnp.pad(w1, ((0, d_in_p - d_in), (0, d_hid_p - d_hid)))
        b1_p = jnp.pad(b1, (0, d_hid_p - d_hid)).reshape(1, d_hid_p)
        w2_p = jnp.pad(w2, ((0, d_hid_p - d_hid), (0, d_in_p - d_in)))
        b2_p = jnp.pad(b2, (0, d_in_p - d_in)).reshape(1, d_in_p)
        gamma_p = jnp.pad(gamma, (0, d_in_p - d_in)).reshape(1, d_in_p)
        beta_p = jnp.pad(beta, (0, d_in_p - d_in)).reshape(1, d_in_p)

        grid = (rows_p // tm_eff, n_chunks)
        weights_const = (n_chunks == 1)   # constant index_map across the whole grid

        def spec(shape, index_map, constant):
            if single_buffer and constant:
                return pl.BlockSpec(shape, index_map, pipeline_mode=pl.Buffered(1))
            return pl.BlockSpec(shape, index_map)

        in_specs = [
            pl.BlockSpec((tm_eff, d_in_p), lambda i, j: (i, 0)),          # x tile
            spec((d_in_p, th), lambda i, j: (0, j), weights_const),       # w1 chunk
            spec((1, th), lambda i, j: (0, j), weights_const),            # b1 chunk
            spec((th, d_in_p), lambda i, j: (j, 0), weights_const),       # w2 chunk
            spec((1, d_in_p), lambda i, j: (0, 0), True),                 # b2
            spec((1, d_in_p), lambda i, j: (0, 0), True),                 # gamma
            spec((1, d_in_p), lambda i, j: (0, 0), True),                 # beta
        ]

        flops = 4 * rows * d_in * d_hid + 10 * rows * d_in
        bytes_accessed = (x2.size * x2.dtype.itemsize
                          + w1_p.size * w1_p.dtype.itemsize
                          + w2_p.size * w2_p.dtype.itemsize
                          + rows_p * d_in_p * x.dtype.itemsize
                          + (b1_p.size + b2_p.size + gamma_p.size + beta_p.size) * 4)
        cost = pl.CostEstimate(flops=int(flops), transcendentals=int(rows),
                               bytes_accessed=int(bytes_accessed))

        kernel = functools.partial(_ffn_kernel, eps=eps, d_real=d_in)

        out2 = pl.pallas_call(
            kernel,
            out_shape=jax.ShapeDtypeStruct((rows_p, d_in_p), x.dtype),
            grid_spec=pltpu.PrefetchScalarGridSpec(
                num_scalar_prefetch=0,
                grid=grid,
                in_specs=in_specs,
                out_specs=pl.BlockSpec((tm_eff, d_in_p), lambda i, j: (i, 0)),
                scratch_shapes=[pltpu.VMEM((tm_eff, d_in_p), jnp.float32)],
            ),
            compiler_params=pltpu.CompilerParams(
                dimension_semantics=("parallel", "arbitrary"),
                vmem_limit_bytes=plan["vmem_limit"],
            ),
            cost_estimate=cost,
        )(x2, w1_p, b1_p, w2_p, b2_p, gamma_p, beta_p)

        return out2[:rows, :d_in].reshape(B, L, d_in)

    try:
        return run(single_buffer=True, vmem_usable=vmem_detected)
    except Exception:
        # Fallback: pipeline_mode=pl.Buffered(1) (or the aggressive VMEM plan) not supported
        # here -> default double-buffered specs + conservative v7x-safe VMEM budget.
        return run(single_buffer=False,
                   vmem_usable=min(vmem_detected, int(64 * 1024 * 1024 * 0.85)))


def _reference(x, w1, b1, w2, b2, gamma, beta, eps=1e-5):
    # Pure-JAX reference mimicking the PyTorch forward (eval mode), computed in f32.
    x = x.astype(jnp.float32)
    h = jnp.maximum(jnp.einsum("bld,dh->blh", x, w1.astype(jnp.float32)) + b1, 0.0)
    y = jnp.einsum("blh,hd->bld", h, w2.astype(jnp.float32)) + b2
    z = y + x
    mean = jnp.mean(z, axis=-1, keepdims=True)
    var = jnp.mean((z - mean) ** 2, axis=-1, keepdims=True)
    return (z - mean) / jnp.sqrt(var + eps) * gamma + beta


def _make_case(key, B, L, d_in, d_hid):
    k_x, k_w1, k_b1, k_w2, k_b2 = jax.random.split(key, 5)
    x = jax.random.normal(k_x, (B, L, d_in), dtype=jnp.float32)
    # Conv1d(d_in, d_hid, 1) weight is (d_hid, d_in, 1) in torch; stored pre-transposed
    # as (d_in, d_hid) so the kernel does x @ w1.
    w1 = jax.random.normal(k_w1, (d_in, d_hid), dtype=jnp.float32) * (1.0 / jnp.sqrt(d_in))
    b1 = jax.random.normal(k_b1, (d_hid,), dtype=jnp.float32) * 0.01
    w2 = jax.random.normal(k_w2, (d_hid, d_in), dtype=jnp.float32) * (1.0 / jnp.sqrt(d_hid))
    b2 = jax.random.normal(k_b2, (d_in,), dtype=jnp.float32) * 0.01
    gamma = jnp.ones((d_in,), dtype=jnp.float32)
    beta = jnp.zeros((d_in,), dtype=jnp.float32)
    return x, w1, b1, w2, b2, gamma, beta


if __name__ == "__main__":
    key = jax.random.PRNGKey(0)
    k0, k1, k2 = jax.random.split(key, 3)

    # Case 0: small shapes matching the module (d_in=32, d_hid=64); exercises feature
    # padding, resident weights, and the >=2 row-tile split for the parallel axis.
    args0 = _make_case(k0, B=2, L=8, d_in=32, d_hid=64)
    out0 = jax.block_until_ready(positionwise_feed_forward(*args0))
    ref0 = _reference(*args0)
    assert out0.shape == args0[0].shape
    assert jnp.allclose(out0, ref0, atol=1e-4, rtol=1e-4), "mismatch vs reference (case 0)"

    # Case 1: odd row count / odd feature dims + forced hidden tiling (2 chunks) so the
    # f32 accumulator init/finalize across the reduction grid axis is exercised.
    args1 = _make_case(k1, B=2, L=5, d_in=48, d_hid=96)
    out1 = jax.block_until_ready(positionwise_feed_forward(*args1, hidden_chunks=2))
    ref1 = _reference(*args1)
    assert out1.shape == args1[0].shape
    assert jnp.allclose(out1, ref1, atol=1e-4, rtol=1e-4), "mismatch vs reference (case 1)"

    # Case 2: bf16 activations/weights (bf16 MXU path, 16-row sublane packing).
    x, w1, b1, w2, b2, gamma, beta = _make_case(k2, B=2, L=8, d_in=128, d_hid=256)
    xb, w1b, w2b = x.astype(jnp.bfloat16), w1.astype(jnp.bfloat16), w2.astype(jnp.bfloat16)
    out2 = jax.block_until_ready(
        positionwise_feed_forward(xb, w1b, b1, w2b, b2, gamma, beta))
    ref2 = _reference(xb, w1b, b1, w2b, b2, gamma, beta)
    assert out2.shape == xb.shape and out2.dtype == jnp.bfloat16
    assert jnp.allclose(out2.astype(jnp.float32), ref2, atol=1e-1, rtol=1e-1), \
        "mismatch vs reference (case 2, bf16)"

    print("KERNEL_OK")
</pallas_src>

<mosaic_0001>
module attributes {stable_mosaic.version = 11 : i64} {
  func.func @_ffn_kernel(%arg0: i32, %arg1: i32, %arg2: memref<8x128xf32, #tpu.memory_space<vmem>>, %arg3: memref<128x128xf32, #tpu.memory_space<vmem>>, %arg4: memref<1x128xf32, #tpu.memory_space<vmem>>, %arg5: memref<128x128xf32, #tpu.memory_space<vmem>>, %arg6: memref<1x128xf32, #tpu.memory_space<vmem>>, %arg7: memref<1x128xf32, #tpu.memory_space<vmem>>, %arg8: memref<1x128xf32, #tpu.memory_space<vmem>>, %arg9: memref<8x128xf32, #tpu.memory_space<vmem>>, %arg10: memref<8x128xf32, #tpu.memory_space<vmem>>) attributes {dimension_semantics = [#tpu.dimension_semantics<parallel>, #tpu.dimension_semantics<arbitrary>], iteration_bounds = array<i64: 2, 1>, scalar_prefetch = 0 : i64, scratch_operands = 1 : i64, tpu.core_type = #tpu.core_type<tc>, window_params = [{transform_indices = @transform_0, window_bounds = array<i64: 8, 128>}, {pipeline_mode = #tpu.pipeline_mode<synchronous>, transform_indices = @transform_1, window_bounds = array<i64: 128, 128>}, {pipeline_mode = #tpu.pipeline_mode<synchronous>, transform_indices = @transform_2, window_bounds = array<i64: 1, 128>}, {pipeline_mode = #tpu.pipeline_mode<synchronous>, transform_indices = @transform_3, window_bounds = array<i64: 128, 128>}, {pipeline_mode = #tpu.pipeline_mode<synchronous>, transform_indices = @transform_4, window_bounds = array<i64: 1, 128>}, {pipeline_mode = #tpu.pipeline_mode<synchronous>, transform_indices = @transform_5, window_bounds = array<i64: 1, 128>}, {pipeline_mode = #tpu.pipeline_mode<synchronous>, transform_indices = @transform_6, window_bounds = array<i64: 1, 128>}, {transform_indices = @transform_7, window_bounds = array<i64: 8, 128>}]} {
    %c0_i32 = arith.constant 0 : i32
    %0 = arith.cmpi eq, %arg1, %c0_i32 : i32
    %1 = arith.extui %0 : i1 to i32
    %c0_i32_0 = arith.constant 0 : i32
    %2 = arith.cmpi ne, %1, %c0_i32_0 : i32
    scf.if %2 {
      %cst_16 = arith.constant 0.000000e+00 : f32
      %19 = vector.broadcast %cst_16 : f32 to vector<8x128xf32>
      %c0_17 = arith.constant 0 : index
      %c0_18 = arith.constant 0 : index
      %20 = vector.load %arg10[%c0_17, %c0_18] : memref<8x128xf32, #tpu.memory_space<vmem>>, vector<8x128xf32>
      tpu.vector_store %arg10[%c0_17, %c0_18], %19 {strides = array<i32>} : memref<8x128xf32, #tpu.memory_space<vmem>>, vector<8x128xf32>,
    } else {
    }
    %c0 = arith.constant 0 : index
    %c0_1 = arith.constant 0 : index
    %3 = vector.load %arg2[%c0, %c0_1] : memref<8x128xf32, #tpu.memory_space<vmem>>, vector<8x128xf32>
    %c0_2 = arith.constant 0 : index
    %c0_3 = arith.constant 0 : index
    %4 = vector.load %arg3[%c0_2, %c0_3] : memref<128x128xf32, #tpu.memory_space<vmem>>, vector<128x128xf32>
    %cst = arith.constant dense<0.000000e+00> : vector<8x128xf32>
    %5 = tpu.matmul %3, %4, %cst {dimension_numbers = #tpu.dot_dimension_numbers<[1], [0], [0], [1], [0, 0, 1, 1], [], []>} : vector<8x128xf32>, vector<128x128xf32>, vector<8x128xf32> -> vector<8x128xf32>
    %c0_4 = arith.constant 0 : index
    %c0_5 = arith.constant 0 : index
    %6 = vector.load %arg4[%c0_4, %c0_5] : memref<1x128xf32, #tpu.memory_space<vmem>>, vector<1x128xf32>
    %7 = vector.broadcast %6 : vector<1x128xf32> to vector<8x128xf32>
    %8 = arith.addf %5, %7 : vector<8x128xf32>
    %cst_6 = arith.constant 0.000000e+00 : f32
    %9 = vector.broadcast %cst_6 : f32 to vector<8x128xf32>
    %10 = arith.maximumf %8, %9 : vector<8x128xf32>
    %c0_7 = arith.constant 0 : index
    %c0_8 = arith.constant 0 : index
    %11 = vector.load %arg10[%c0_7, %c0_8] : memref<8x128xf32, #tpu.memory_space<vmem>>, vector<8x128xf32>
    %c0_9 = arith.constant 0 : index
    %c0_10 = arith.constant 0 : index
    %12 = vector.load %arg5[%c0_9, %c0_10] : memref<128x128xf32, #tpu.memory_space<vmem>>, vector<128x128xf32>
    %cst_11 = arith.constant dense<0.000000e+00> : vector<8x128xf32>
    %13 = tpu.matmul %10, %12, %cst_11 {dimension_numbers = #tpu.dot_dimension_numbers<[1], [0], [0], [1], [0, 0, 1, 1], [], []>} : vector<8x128xf32>, vector<128x128xf32>, vector<8x128xf32> -> vector<8x128xf32>
    %14 = arith.addf %11, %13 : vector<8x128xf32>
    %c0_12 = arith.constant 0 : index
    %c0_13 = arith.constant 0 : index
    %15 = vector.load %arg10[%c0_12, %c0_13] : memref<8x128xf32, #tpu.memory_space<vmem>>, vector<8x128xf32>
    tpu.vector_store %arg10[%c0_12, %c0_13], %14 {strides = array<i32>} : memref<8x128xf32, #tpu.memory_space<vmem>>, vector<8x128xf32>,
    %c0_i32_14 = arith.constant 0 : i32
    %16 = arith.cmpi eq, %arg1, %c0_i32_14 : i32
    %17 = arith.extui %16 : i1 to i32
    %c0_i32_15 = arith.constant 0 : i32
    %18 = arith.cmpi ne, %17, %c0_i32_15 : i32
    scf.if %18 {
      %c0_16 = arith.constant 0 : index
      %c0_17 = arith.constant 0 : index
      %19 = vector.load %arg10[%c0_16, %c0_17] : memref<8x128xf32, #tpu.memory_space<vmem>>, vector<8x128xf32>
      %c0_18 = arith.constant 0 : index
      %c0_19 = arith.constant 0 : index
      %20 = vector.load %arg6[%c0_18, %c0_19] : memref<1x128xf32, #tpu.memory_space<vmem>>, vector<1x128xf32>
      %21 = vector.broadcast %20 : vector<1x128xf32> to vector<8x128xf32>
      %22 = arith.addf %19, %21 : vector<8x128xf32>
      %23 = arith.addf %22, %3 : vector<8x128xf32>
      %cst_20 = arith.constant dense<0.000000e+00> : vector<8xf32>
      %24 = vector.multi_reduction <add>, %23, %cst_20 [1] : vector<8x128xf32> to vector<8xf32>
      %25 = vector.shape_cast %24 : vector<8xf32> to vector<8x1xf32>
      %cst_21 = arith.constant 3.125000e-02 : f32
      %26 = vector.broadcast %cst_21 : f32 to vector<8x1xf32>
      %27 = arith.mulf %25, %26 : vector<8x1xf32>
      %28 = vector.broadcast %27 : vector<8x1xf32> to vector<8x128xf32>
      %29 = arith.subf %23, %28 : vector<8x128xf32>
      %30 = tpu.iota {dimensions = array<i32: 1>} : vector<1x128xi32>
      %c32_i32 = arith.constant 32 : i32
      %31 = vector.broadcast %c32_i32 : i32 to vector<1x128xi32>
      %32 = arith.cmpi slt, %30, %31 : vector<1x128xi32>
      %33 = arith.extui %32 : vector<1x128xi1> to vector<1x128xi32>
      %34 = arith.sitofp %33 : vector<1x128xi32> to vector<1x128xf32>
      %35 = vector.broadcast %34 : vector<1x128xf32> to vector<8x128xf32>
      %36 = arith.mulf %29, %35 : vector<8x128xf32>
      %37 = arith.mulf %36, %36 : vector<8x128xf32>
      %cst_22 = arith.constant dense<0.000000e+00> : vector<8xf32>
      %38 = vector.multi_reduction <add>, %37, %cst_22 [1] : vector<8x128xf32> to vector<8xf32>
      %39 = vector.shape_cast %38 : vector<8xf32> to vector<8x1xf32>
      %cst_23 = arith.constant 3.125000e-02 : f32
      %40 = vector.broadcast %cst_23 : f32 to vector<8x1xf32>
      %41 = arith.mulf %39, %40 : vector<8x1xf32>
      %cst_24 = arith.constant 9.99999974E-6 : f32
      %42 = vector.broadcast %cst_24 : f32 to vector<8x1xf32>
      %43 = arith.addf %41, %42 : vector<8x1xf32>
      %44 = math.rsqrt %43 : vector<8x1xf32>
      %45 = vector.broadcast %44 : vector<8x1xf32> to vector<8x128xf32>
      %46 = arith.mulf %36, %45 : vector<8x128xf32>
      %c0_25 = arith.constant 0 : index
      %c0_26 = arith.constant 0 : index
      %47 = vector.load %arg7[%c0_25, %c0_26] : memref<1x128xf32, #tpu.memory_space<vmem>>, vector<1x128xf32>
      %48 = vector.broadcast %47 : vector<1x128xf32> to vector<8x128xf32>
      %49 = arith.mulf %46, %48 : vector<8x128xf32>
      %c0_27 = arith.constant 0 : index
      %c0_28 = arith.constant 0 : index
      %50 = vector.load %arg8[%c0_27, %c0_28] : memref<1x128xf32, #tpu.memory_space<vmem>>, vector<1x128xf32>
      %51 = vector.broadcast %50 : vector<1x128xf32> to vector<8x128xf32>
      %52 = arith.addf %49, %51 : vector<8x128xf32>
      %c0_29 = arith.constant 0 : index
      %c0_30 = arith.constant 0 : index
      %53 = vector.load %arg9[%c0_29, %c0_30] : memref<8x128xf32, #tpu.memory_space<vmem>>, vector<8x128xf32>
      tpu.vector_store %arg9[%c0_29, %c0_30], %52 {strides = array<i32>} : memref<8x128xf32, #tpu.memory_space<vmem>>, vector<8x128xf32>,
    } else {
    }
    return
  }
  func.func @transform_0(%arg0: i32, %arg1: i32) -> (i32, i32) {
    %c0_i32 = arith.constant 0 : i32
    %c0_i32_0 = arith.constant 0 : i32
    return %arg0, %c0_i32 : i32, i32
  }
  func.func @transform_1(%arg0: i32, %arg1: i32) -> (i32, i32) {
    %c0_i32 = arith.constant 0 : i32
    %c0_i32_0 = arith.constant 0 : i32
    return %c0_i32, %arg1 : i32, i32
  }
  func.func @transform_2(%arg0: i32, %arg1: i32) -> (i32, i32) {
    %c0_i32 = arith.constant 0 : i32
    %c0_i32_0 = arith.constant 0 : i32
    return %c0_i32, %arg1 : i32, i32
  }
  func.func @transform_3(%arg0: i32, %arg1: i32) -> (i32, i32) {
    %c0_i32 = arith.constant 0 : i32
    %c0_i32_0 = arith.constant 0 : i32
    return %arg1, %c0_i32 : i32, i32
  }
  func.func @transform_4(%arg0: i32, %arg1: i32) -> (i32, i32) {
    %c0_i32 = arith.constant 0 : i32
    %c0_i32_0 = arith.constant 0 : i32
    %c0_i32_1 = arith.constant 0 : i32
    return %c0_i32, %c0_i32_0 : i32, i32
  }
  func.func @transform_5(%arg0: i32, %arg1: i32) -> (i32, i32) {
    %c0_i32 = arith.constant 0 : i32
    %c0_i32_0 = arith.constant 0 : i32
    %c0_i32_1 = arith.constant 0 : i32
    return %c0_i32, %c0_i32_0 : i32, i32
  }
  func.func @transform_6(%arg0: i32, %arg1: i32) -> (i32, i32) {
    %c0_i32 = arith.constant 0 : i32
    %c0_i32_0 = arith.constant 0 : i32
    %c0_i32_1 = arith.constant 0 : i32
    return %c0_i32, %c0_i32_0 : i32, i32
  }
  func.func @transform_7(%arg0: i32, %arg1: i32) -> (i32, i32) {
    %c0_i32 = arith.constant 0 : i32
    %c0_i32_0 = arith.constant 0 : i32
    return %arg0, %c0_i32 : i32, i32
  }
}

module attributes {stable_mosaic.version = 11 : i64} {
  func.func @_ffn_kernel(%arg0: i32, %arg1: i32, %arg2: memref<8x128xf32, #tpu.memory_space<vmem>>, %arg3: memref<128x128xf32, #tpu.memory_space<vmem>>, %arg4: memref<1x128xf32, #tpu.memory_space<vmem>>, %arg5: memref<128x128xf32, #tpu.memory_space<vmem>>, %arg6: memref<1x128xf32, #tpu.memory_space<vmem>>, %arg7: memref<1x128xf32, #tpu.memory_space<vmem>>, %arg8: memref<1x128xf32, #tpu.memory_space<vmem>>, %arg9: memref<8x128xf32, #tpu.memory_space<vmem>>, %arg10: memref<8x128xf32, #tpu.memory_space<vmem>>) attributes {dimension_semantics = [#tpu.dimension_semantics<parallel>, #tpu.dimension_semantics<arbitrary>], iteration_bounds = array<i64: 2, 1>, scalar_prefetch = 0 : i64, scratch_operands = 1 : i64, tpu.core_type = #tpu.core_type<tc>, window_params = [{transform_indices = @transform_0, window_bounds = array<i64: 8, 128>}, {transform_indices = @transform_1, window_bounds = array<i64: 128, 128>}, {transform_indices = @transform_2, window_bounds = array<i64: 1, 128>}, {transform_indices = @transform_3, window_bounds = array<i64: 128, 128>}, {pipeline_mode = #tpu.pipeline_mode<synchronous>, transform_indices = @transform_4, window_bounds = array<i64: 1, 128>}, {pipeline_mode = #tpu.pipeline_mode<synchronous>, transform_indices = @transform_5, window_bounds = array<i64: 1, 128>}, {pipeline_mode = #tpu.pipeline_mode<synchronous>, transform_indices = @transform_6, window_bounds = array<i64: 1, 128>}, {transform_indices = @transform_7, window_bounds = array<i64: 8, 128>}]} {
    %c0_i32 = arith.constant 0 : i32
    %0 = arith.cmpi eq, %arg1, %c0_i32 : i32
    %1 = arith.extui %0 : i1 to i32
    %c0_i32_0 = arith.constant 0 : i32
    %2 = arith.cmpi ne, %1, %c0_i32_0 : i32
    scf.if %2 {
      %cst_16 = arith.constant 0.000000e+00 : f32
      %19 = vector.broadcast %cst_16 : f32 to vector<8x128xf32>
      %c0_17 = arith.constant 0 : index
      %c0_18 = arith.constant 0 : index
      %20 = vector.load %arg10[%c0_17, %c0_18] : memref<8x128xf32, #tpu.memory_space<vmem>>, vector<8x128xf32>
      tpu.vector_store %arg10[%c0_17, %c0_18], %19 {strides = array<i32>} : memref<8x128xf32, #tpu.memory_space<vmem>>, vector<8x128xf32>,
    } else {
    }
    %c0 = arith.constant 0 : index
    %c0_1 = arith.constant 0 : index
    %3 = vector.load %arg2[%c0, %c0_1] : memref<8x128xf32, #tpu.memory_space<vmem>>, vector<8x128xf32>
    %c0_2 = arith.constant 0 : index
    %c0_3 = arith.constant 0 : index
    %4 = vector.load %arg3[%c0_2, %c0_3] : memref<128x128xf32, #tpu.memory_space<vmem>>, vector<128x128xf32>
    %cst = arith.constant dense<0.000000e+00> : vector<8x128xf32>
    %5 = tpu.matmul %3, %4, %cst {dimension_numbers = #tpu.dot_dimension_numbers<[1], [0], [0], [1], [0, 0, 1, 1], [], []>} : vector<8x128xf32>, vector<128x128xf32>, vector<8x128xf32> -> vector<8x128xf32>
    %c0_4 = arith.constant 0 : index
    %c0_5 = arith.constant 0 : index
    %6 = vector.load %arg4[%c0_4, %c0_5] : memref<1x128xf32, #tpu.memory_space<vmem>>, vector<1x128xf32>
    %7 = vector.broadcast %6 : vector<1x128xf32> to vector<8x128xf32>
    %8 = arith.addf %5, %7 : vector<8x128xf32>
    %cst_6 = arith.constant 0.000000e+00 : f32
    %9 = vector.broadcast %cst_6 : f32 to vector<8x128xf32>
    %10 = arith.maximumf %8, %9 : vector<8x128xf32>
    %c0_7 = arith.constant 0 : index
    %c0_8 = arith.constant 0 : index
    %11 = vector.load %arg10[%c0_7, %c0_8] : memref<8x128xf32, #tpu.memory_space<vmem>>, vector<8x128xf32>
    %c0_9 = arith.constant 0 : index
    %c0_10 = arith.constant 0 : index
    %12 = vector.load %arg5[%c0_9, %c0_10] : memref<128x128xf32, #tpu.memory_space<vmem>>, vector<128x128xf32>
    %cst_11 = arith.constant dense<0.000000e+00> : vector<8x128xf32>
    %13 = tpu.matmul %10, %12, %cst_11 {dimension_numbers = #tpu.dot_dimension_numbers<[1], [0], [0], [1], [0, 0, 1, 1], [], []>} : vector<8x128xf32>, vector<128x128xf32>, vector<8x128xf32> -> vector<8x128xf32>
    %14 = arith.addf %11, %13 : vector<8x128xf32>
    %c0_12 = arith.constant 0 : index
    %c0_13 = arith.constant 0 : index
    %15 = vector.load %arg10[%c0_12, %c0_13] : memref<8x128xf32, #tpu.memory_space<vmem>>, vector<8x128xf32>
    tpu.vector_store %arg10[%c0_12, %c0_13], %14 {strides = array<i32>} : memref<8x128xf32, #tpu.memory_space<vmem>>, vector<8x128xf32>,
    %c0_i32_14 = arith.constant 0 : i32
    %16 = arith.cmpi eq, %arg1, %c0_i32_14 : i32
    %17 = arith.extui %16 : i1 to i32
    %c0_i32_15 = arith.constant 0 : i32
    %18 = arith.cmpi ne, %17, %c0_i32_15 : i32
    scf.if %18 {
      %c0_16 = arith.constant 0 : index
      %c0_17 = arith.constant 0 : index
      %19 = vector.load %arg10[%c0_16, %c0_17] : memref<8x128xf32, #tpu.memory_space<vmem>>, vector<8x128xf32>
      %c0_18 = arith.constant 0 : index
      %c0_19 = arith.constant 0 : index
      %20 = vector.load %arg6[%c0_18, %c0_19] : memref<1x128xf32, #tpu.memory_space<vmem>>, vector<1x128xf32>
      %21 = vector.broadcast %20 : vector<1x128xf32> to vector<8x128xf32>
      %22 = arith.addf %19, %21 : vector<8x128xf32>
      %23 = arith.addf %22, %3 : vector<8x128xf32>
      %cst_20 = arith.constant dense<0.000000e+00> : vector<8xf32>
      %24 = vector.multi_reduction <add>, %23, %cst_20 [1] : vector<8x128xf32> to vector<8xf32>
      %25 = vector.shape_cast %24 : vector<8xf32> to vector<8x1xf32>
      %cst_21 = arith.constant 3.125000e-02 : f32
      %26 = vector.broadcast %cst_21 : f32 to vector<8x1xf32>
      %27 = arith.mulf %25, %26 : vector<8x1xf32>
      %28 = vector.broadcast %27 : vector<8x1xf32> to vector<8x128xf32>
      %29 = arith.subf %23, %28 : vector<8x128xf32>
      %30 = tpu.iota {dimensions = array<i32: 1>} : vector<1x128xi32>
      %c32_i32 = arith.constant 32 : i32
      %31 = vector.broadcast %c32_i32 : i32 to vector<1x128xi32>
      %32 = arith.cmpi slt, %30, %31 : vector<1x128xi32>
      %33 = arith.extui %32 : vector<1x128xi1> to vector<1x128xi32>
      %34 = arith.sitofp %33 : vector<1x128xi32> to vector<1x128xf32>
      %35 = vector.broadcast %34 : vector<1x128xf32> to vector<8x128xf32>
      %36 = arith.mulf %29, %35 : vector<8x128xf32>
      %37 = arith.mulf %36, %36 : vector<8x128xf32>
      %cst_22 = arith.constant dense<0.000000e+00> : vector<8xf32>
      %38 = vector.multi_reduction <add>, %37, %cst_22 [1] : vector<8x128xf32> to vector<8xf32>
      %39 = vector.shape_cast %38 : vector<8xf32> to vector<8x1xf32>
      %cst_23 = arith.constant 3.125000e-02 : f32
      %40 = vector.broadcast %cst_23 : f32 to vector<8x1xf32>
      %41 = arith.mulf %39, %40 : vector<8x1xf32>
      %cst_24 = arith.constant 9.99999974E-6 : f32
      %42 = vector.broadcast %cst_24 : f32 to vector<8x1xf32>
      %43 = arith.addf %41, %42 : vector<8x1xf32>
      %44 = math.rsqrt %43 : vector<8x1xf32>
      %45 = vector.broadcast %44 : vector<8x1xf32> to vector<8x128xf32>
      %46 = arith.mulf %36, %45 : vector<8x128xf32>
      %c0_25 = arith.constant 0 : index
      %c0_26 = arith.constant 0 : index
      %47 = vector.load %arg7[%c0_25, %c0_26] : memref<1x128xf32, #tpu.memory_space<vmem>>, vector<1x128xf32>
      %48 = vector.broadcast %47 : vector<1x128xf32> to vector<8x128xf32>
      %49 = arith.mulf %46, %48 : vector<8x128xf32>
      %c0_27 = arith.constant 0 : index
      %c0_28 = arith.constant 0 : index
      %50 = vector.load %arg8[%c0_27, %c0_28] : memref<1x128xf32, #tpu.memory_space<vmem>>, vector<1x128xf32>
      %51 = vector.broadcast %50 : vector<1x128xf32> to vector<8x128xf32>
      %52 = arith.addf %49, %51 : vector<8x128xf32>
      %c0_29 = arith.constant 0 : index
      %c0_30 = arith.constant 0 : index
      %53 = vector.load %arg9[%c0_29, %c0_30] : memref<8x128xf32, #tpu.memory_space<vmem>>, vector<8x128xf32>
      tpu.vector_store %arg9[%c0_29, %c0_30], %52 {strides = array<i32>} : memref<8x128xf32, #tpu.memory_space<vmem>>, vector<8x128xf32>,
    } else {
    }
    return
  }
  func.func @transform_0(%arg0: i32, %arg1: i32) -> (i32, i32) {
    %c0_i32 = arith.constant 0 : i32
    %c0_i32_0 = arith.constant 0 : i32
    return %arg0, %c0_i32 : i32, i32
  }
  func.func @transform_1(%arg0: i32, %arg1: i32) -> (i32, i32) {
    %c0_i32 = arith.constant 0 : i32
    %c0_i32_0 = arith.constant 0 : i32
    return %c0_i32, %arg1 : i32, i32
  }
  func.func @transform_2(%arg0: i32, %arg1: i32) -> (i32, i32) {
    %c0_i32 = arith.constant 0 : i32
    %c0_i32_0 = arith.constant 0 : i32
    return %c0_i32, %arg1 : i32, i32
  }
  func.func @transform_3(%arg0: i32, %arg1: i32) -> (i32, i32) {
    %c0_i32 = arith.constant 0 : i32
    %c0_i32_0 = arith.constant 0 : i32
    return %arg1, %c0_i32 : i32, i32
  }
  func.func @transform_4(%arg0: i32, %arg1: i32) -> (i32, i32) {
    %c0_i32 = arith.constant 0 : i32
    %c0_i32_0 = arith.constant 0 : i32
    %c0_i32_1 = arith.constant 0 : i32
    return %c0_i32, %c0_i32_0 : i32, i32
  }
  func.func @transform_5(%arg0: i32, %arg1: i32) -> (i32, i32) {
    %c0_i32 = arith.constant 0 : i32
    %c0_i32_0 = arith.constant 0 : i32
    %c0_i32_1 = arith.constant 0 : i32
    return %c0_i32, %c0_i32_0 : i32, i32
  }
  func.func @transform_6(%arg0: i32, %arg1: i32) -> (i32, i32) {
    %c0_i32 = arith.constant 0 : i32
    %c0_i32_0 = arith.constant 0 : i32
    %c0_i32_1 = arith.constant 0 : i32
    return %c0_i32, %c0_i32_0 : i32, i32
  }
  func.func @transform_7(%arg0: i32, %arg1: i32) -> (i32, i32) {
    %c0_i32 = arith.constant 0 : i32
    %c0_i32_0 = arith.constant 0 : i32
    return %arg0, %c0_i32 : i32, i32
  }
}

</mosaic_0001>

<bundles_post_ra>
// kernel: tpu_custom_call.1
= control target key start
LH: loop header
LB: loop body
LE: loop exit
PB: predicated region body
PF: predicated region fallthrough
CT: control target
= control target key end

     0   :  { %s1130_s0 = inlined_call_operand.hbm [shape: f32[16,128], index: 0, kind: input, shape index: {}]   ;;  %s1131_s1 = inlined_call_operand.hbm [shape: f32[128,128], index: 1, kind: input, shape index: {}]   ;;  %s1132_s2 = inlined_call_operand.vmem [shape: f32[1,128], index: 2, kind: input, shape index: {}]   ;;  %s1133_s3 = inlined_call_operand.hbm [shape: f32[128,128], index: 3, kind: input, shape index: {}]   ;;  %s1134_s4 = inlined_call_operand.vmem [shape: f32[1,128], index: 4, kind: input, shape index: {}]   ;;  %s1135_s5 = inlined_call_operand.vmem [shape: f32[1,128], index: 5, kind: input, shape index: {}]   ;;  %s1136_s6 = inlined_call_operand.vmem [shape: f32[1,128], index: 6, kind: input, shape index: {}]   ;;  %s1137_s7 = inlined_call_operand.hbm [shape: f32[16,128], index: 7, kind: output, shape index: {}]  }
   0x1   :  { %1138 = sst [smem:[#allocation13_spill]] %s1131_s1 }
   0x2   :  { %12 = vsyncpa [#allocation4], 0 }
   0x3   :  { %14 = vsyncpa [#allocation4 + $0x1], 0 }
   0x4   :  { %15 = vsyncpa [#allocation7], 0 }
   0x5   :  { %16 = vsyncpa [#allocation5], 0 }
   0x6   :  { %18 = vsyncpa [#allocation5 + $0x1], 0  ;;  %s967_s24 = smov 0   ;;  %s969_s25 = smov 0  }
   0x7   :  { %s971_s26 = smov 0   ;;  %s973_s27 = smov 0  }
   0x8   :  { %s975_s28 = smov 0   ;;  %s977_s29 = smov 0  }
   0x9 LB: > { %s633_s30 = sadd.s32 4294967295, %s920_s29   ;;  %p635_p0 = scmp.ge.s32.totalorder %s920_s29, 1  ;;  %s920_s29 = sphi %s977_s29, %s24_s29   ;;  %s916_s28 = sphi %s975_s28, %s1149_s28   ;;  %s912_s27 = sphi %s973_s27, %s1148_s27   ;;  %s908_s26 = sphi %s971_s26, %s1147_s26   ;;  %s904_s25 = sphi %s969_s25, %s1146_s25   ;;  %s900_s24 = sphi %s967_s24, %s1145_s24  }
   0xa   : > { %p1001_p1 = scmp.eq.s32.totalorder %s633_s30, 0  ;;  %p234_p2 = scmp.lt.s32.totalorder %s920_s29, 3 }
   0xb   : > { %s1140_s1 = sld [smem:[#allocation13_spill]]  ;;  %s922_s13 = smov [#allocation6]  }
   0xc   : > { %p1009_p3 = pnand %p635_p0, %p234_p2  ;;  %s249_s14 = sshll.u32 %s922_s13, 4  ;;  %s250_s14 = int_to_ptr.vmem [resolvable:$true] %s249_s14 }
   0xd   : > { %p639_p6 = scmp.ge.s32.totalorder %s920_s29, 2  ;;  %s270_s17 = sshll.u32 %s1133_s3, 4  ;;  %s271_s17 = int_to_ptr.hbm [resolvable:$true] %s270_s17 }
   0xe   : > { %p664_p4 = pneg %p1009_p3  ;;  %s923_s18 = smov 128  }
   0xf   : > { %s924_s19 = smov 8   ;;  %s925_s20 = smov [#allocation8]  }
  0x10   : > { %p665_p5 = pnand %p664_p4, %p1001_p1  ;;  %s272_s21 = sshll.u32 %s925_s20, 4  ;;  %s273_s21 = int_to_ptr.vmem [resolvable:$true] %s272_s21 }
  0x11   : > { %s247_s11 = sshll.u32 %s1140_s1, 4  ;;  %s36_s22 = sadd.s32 1, %s916_s28  ;;  %s248_s11 = int_to_ptr.hbm [resolvable:$true] %s247_s11 }
  0x12   : > { %667 = dma.hbm_to_vmem [thread:$0]  (!%p665_p5), %s248_s11, 2048, %s250_s14, [#allocation7], %s923_s18, %s923_s18, %s924_s19  }
  0x13   : > { %670 = dma.hbm_to_vmem [thread:$0]  (!%p665_p5), %s271_s17, 2048, %s273_s21, [#allocation7], %s923_s18, %s923_s18, %s924_s19  }
  0x14   : > { %s634_s23 = sadd.s32 4294967294, %s920_s29   ;;  %p38_p7 = scmp.ge.s32.totalorder %s36_s22, 2 }
  0x15   : > { %s43_s9 = sadd.s32 1, %s908_s26  ;;  %p50_p8 = scmp.ne.s32.totalorder %s908_s26, %s904_s25 }
  0x16   : > { %s1151_s22 = smov (%p38_p7, %s36_s22), 0  ;;  %p51_p9 = scmp.eq.s32.totalorder %s920_s29, 0 }
  0x17   : > { %p56_p10 = scmp.ne.s32.totalorder %s904_s25, %s900_s24  ;;  %s40_s10 = ssub.s32 %s916_s28, %s1151_s22 }
  0x18   : > { %p221_p11 = scmp.eq.s32.totalorder %s633_s30, 1  ;;  %p41_p12 = scmp.eq.s32.totalorder %s40_s10, 0 }
  0x19   : > { %p1037_p13 = por %p1001_p1, %p56_p10  ;;  %p227_p2 = scmp.eq.s32.totalorder %s634_s23, 1 }
  0x1a   : > { %p1041_p0 = por %p221_p11, %p50_p8  ;;  %p52_p4 = por %p51_p9, %p50_p8 }
  0x1b   : > { %s1046_s14 = scalar_select %p41_p12, %s908_s26, %s43_s9  }
  0x1c   : > { %p1048_p5 = por %p227_p2, %p56_p10  ;;  %s295_s16 = sand.u32 1, %s908_s26  }
  0x1d   : > { %s641_s30 = sshll.u32 %s916_s28, 3  ;;  %p681_p7 = scmp.lt.s32.totalorder %s920_s29, 2 }
  0x1e   : > { %s640_s17 = sshll.u32 %s295_s16, 3  ;;  %s303_s20 = scalar_lea.hbm %s1130_s0, %s641_s30 }
  0x1f   : > { %s305_s21 = sshll.u32 %s303_s20, 4  ;;  %s299_s10 = scalar_lea.vmem [#allocation3], %s640_s17  ;;  %s306_s21 = int_to_ptr.hbm [resolvable:$true] %s305_s21 }
  0x20   : > { %s307_s1 = sshll.u32 %s299_s10, 4  ;;  %p672_p11 = pnand %p681_p7, %p52_p4  ;;  %s308_s1 = int_to_ptr.vmem [resolvable:$true] %s307_s1 }
  0x21   : > { %s296_s23 = scalar_lea.sflag [#allocation4], %s295_s16  ;;  %316 = sbr.rel (%p1009_p3) target bundleno = 604 (0x25c), region = 48 }
  0x22   : > { %674 = dma.hbm_to_vmem [thread:$0]  (!%p672_p11), %s306_s21, 128, %s308_s1, %s296_s23  }
  0x23   : > { %s1061_s9 = sand.u32 (!%p1009_p3), 1, %s904_s25  }
  0x24   : > { %s643_s18 = sshll.u32 (!%p1009_p3), %s1061_s9, 3  ;;  %s319_s30 = scalar_lea.sflag (!%p1009_p3), [#allocation4], %s1061_s9 }
  0x25   : > { %s1067_s17 = scalar_lea.vmem (!%p1009_p3), [#allocation3], %s643_s18 }
  0x26   : > { %887 = dma.done.wait (%p1037_p13), %s319_s30, 128  }
  0x27   : > { %889 = vsyncadd (%p1037_p13), %s319_s30, 4294967168 }
  0x28   : > { %891 = dma.done.wait (%p1001_p1), [#allocation7], 4096  }
  0x29   : > { %893 = vsyncadd (%p1001_p1), [#allocation7], 4294963200  ;;  %v392_v0 = vld [vmem:[#allocation6 + $0x78] sm:$0xff]  ;;  %v391_v1 = vld [vmem:[#allocation6 + $0x70] sm:$0xff]  ;;  %v471_v41 = vlaneseq  ;;  %v926_v45 = vmov 0.0   ;;  %s649_s16 = sshll.u32 %s912_s27, 3 }
  0x2a   : > { %397 = vmatpush.msra.mxu0 %v392_v0  ;;  %v390_v2 = vld [vmem:[#allocation6 + $0x68] sm:$0xff]  ;;  %v389_v3 = vld [vmem:[#allocation6 + $0x60] sm:$0xff]  ;;  %v434_v4 = vld [vmem:[#allocation8 + $0x78] sm:$0xff]  ;;  %s515_s23 = scalar_lea.hbm %s1137_s7, %s649_s16  ;;  %s366_s27 = scalar_lea.vmem [#allocation9], %s643_s18 }
  0x2b   : > { %v388_v5 = vld [vmem:[#allocation6 + $0x58] sm:$0xff]  ;;  %435 = vmatpush.msra.mxu1 %v434_v4  ;;  %v433_v6 = vld [vmem:[#allocation8 + $0x70] sm:$0xff]  ;;  %v432_v7 = vld [vmem:[#allocation8 + $0x68] sm:$0xff]  ;;  %v472_v42 = vand.u32 127, %v471_v41  ;;  %s517_s1 = sshll.u32 %s366_s27, 4  ;;  %s519_s8 = sshll.u32 %s515_s23, 4  ;;  %s518_s1 = int_to_ptr.vmem [resolvable:$true] %s517_s1  ;;  %s520_s8 = int_to_ptr.hbm [resolvable:$true] %s519_s8 }
  0x2c   : > { %398 = vmatpush.msra.mxu0 %v391_v1  ;;  %v387_v8 = vld [vmem:[#allocation6 + $0x50] sm:$0xff]  ;;  %v431_v9 = vld [vmem:[#allocation8 + $0x60] sm:$0xff]  ;;  %v386_v10 = vld [vmem:[#allocation6 + $0x48] sm:$0xff]  ;;  %s505_s12 = scalar_lea.sflag [#allocation5], %s1061_s9  ;;  %s848_s11 = sshra.s32 %s520_s8, 4  ;;  %s849_s11 = int_to_ptr.hbm [resolvable:$true] %s848_s11 }
  0x2d   : > { %436 = vmatpush.msra.mxu1 %v433_v6  ;;  %v430_v11 = vld [vmem:[#allocation8 + $0x58] sm:$0xff]  ;;  %v385_v12 = vld [vmem:[#allocation6 + $0x40] sm:$0xff]  ;;  %v429_v13 = vld [vmem:[#allocation8 + $0x50] sm:$0xff]  ;;  %vm473_vm0 = vcmp.lt.s32.totalorder %v472_v42, 32  ;;  %s850_s16 = scalar_lea.hbm %s849_s11, 8  ;;  %s854_s21 = scalar_lea.hbm %s1137_s7, 16 }
  0x2e   : > { %399 = vmatpush.msra.mxu0 %v390_v2  ;;  %v384_v14 = vld [vmem:[#allocation6 + $0x38] sm:$0xff]  ;;  %v428_v15 = vld [vmem:[#allocation8 + $0x48] sm:$0xff]  ;;  %v383_v16 = vld [vmem:[#allocation6 + $0x30] sm:$0xff]  ;;  %v647_v46 = vsel %vm473_vm0, 1.0, %v926_v45  ;;  %p851_p1 = scmp.ne.s32.totalorder %s849_s11, %s850_s16  ;;  %p855_p9 = scmp.lt.s32.totalorder %s849_s11, %s1137_s7 }
  0x2f   : > { %437 = vmatpush.msra.mxu1 %v432_v7  ;;  %v427_v17 = vld [vmem:[#allocation8 + $0x40] sm:$0xff]  ;;  %v382_v18 = vld [vmem:[#allocation6 + $0x28] sm:$0xff]  ;;  %v426_v19 = vld [vmem:[#allocation8 + $0x38] sm:$0xff]  ;;  %p856_p10 = scmp.lt.s32.totalorder %s854_s21, %s850_s16 }
  0x30   : > { %400 = vmatpush.msra.mxu0 %v389_v3  ;;  %v381_v20 = vld [vmem:[#allocation6 + $0x20] sm:$0xff]  ;;  %v425_v21 = vld [vmem:[#allocation8 + $0x30] sm:$0xff]  ;;  %v380_v22 = vld [vmem:[#allocation6 + $0x18] sm:$0xff]  ;;  %p852_p3 = pnand %p851_p1, %p1041_p0 }
  0x31   : > { %438 = vmatpush.msra.mxu1 %v431_v9  ;;  %v424_v23 = vld [vmem:[#allocation8 + $0x28] sm:$0xff]  ;;  %v379_v24 = vld [vmem:[#allocation6 + $0x10] sm:$0xff]  ;;  %v423_v25 = vld [vmem:[#allocation8 + $0x20] sm:$0xff]  ;;  %p857_p12 = por %p856_p10, %p855_p9 }
  0x32   : > { %401 = vmatpush.msra.mxu0 %v388_v5  ;;  %v378_v26 = vld [vmem:[#allocation6 + $0x8] sm:$0xff]  ;;  %v422_v27 = vld [vmem:[#allocation8 + $0x18] sm:$0xff]  ;;  %v377_v28 = vld [vmem:[#allocation6] sm:$0xff]  ;;  %p853_p8 = pneg %p852_p3 }
  0x33   : > { %439 = vmatpush.msra.mxu1 %v430_v11  ;;  %v376_v29 = vld [vmem:[%s1067_s17] sm:$0xff]  ;;  %v420_v31 = vld [vmem:[#allocation8 + $0x8] sm:$0xff]  ;;  %v419_v32 = vld [vmem:[#allocation8] sm:$0xff] }
  0x34   : > { %402 = vmatpush.msra.mxu0 %v387_v8  ;;  %v421_v30 = vld [vmem:[#allocation8 + $0x10] sm:$0xff]  ;;  %p858_p13 = pnand %p857_p12, %p853_p8 }
  0x35   : > { %440 = vmatpush.msra.mxu1 %v429_v13  ;;  %v738_v33 = vld [vmem:[%s1132_s2] ss:$0 sm:$0xff] }
  0x36   : > { %403 = vmatpush.msra.mxu0 %v386_v10  ;;  %v739_v37 = vld [vmem:[%s1134_s4] ss:$0 sm:$0xff] }
  0x37   : > { %441 = vmatpush.msra.mxu1 %v428_v15  ;;  %v740_v59 = vld [vmem:[%s1135_s5] ss:$0 sm:$0xff] }
  0x38   : > { %404 = vmatpush.msra.mxu0 %v385_v12  ;;  %v741_v62 = vld [vmem:[%s1136_s6] ss:$0 sm:$0xff] }
  0x39   : > { %442 = vmatpush.msra.mxu1 %v427_v17 }
  0x3a   : > { %405 = vmatpush.msra.mxu0 %v384_v14 }
  0x3b   : > { %443 = vmatpush.msra.mxu1 %v426_v19 }
  0x3c   : > { %406 = vmatpush.msra.mxu0 %v383_v16 }
  0x3d   : > { %444 = vmatpush.msra.mxu1 %v425_v21 }
  0x3e   : > { %407 = vmatpush.msra.mxu0 %v382_v18 }
  0x3f   : > { %445 = vmatpush.msra.mxu1 %v424_v23 }
  0x40   : > { %408 = vmatpush.msra.mxu0 %v381_v20 }
  0x41   : > { %446 = vmatpush.msra.mxu1 %v423_v25 }
  0x42   : > { %409 = vmatpush.msra.mxu0 %v380_v22 }
  0x43   : > { %447 = vmatpush.msra.mxu1 %v422_v27 }
  0x44   : > { %410 = vmatpush.msra.mxu0 %v379_v24 }
  0x45   : > { %448 = vmatpush.msra.mxu1 %v421_v30 }
  0x46   : > { %411 = vmatpush.msra.mxu0 %v378_v26 }
  0x47   : > { %449 = vmatpush.msra.mxu1 %v420_v31 }
  0x48   : > { %412 = vmatpush.msra.mxu0 %v377_v28 }
  0x49   : > { %413 = vmatmul.f32.vlgmr.msra.gmra.mxu0 %v376_v29  ;;  %450 = vmatpush.msra.mxu1 %v419_v32 }
  0xc6   : > { %v414_v34 = vpop.f32.mrf.mxu0 }
  0xc7   : > { %v415_v35 = vadd.f32 %v738_v33, %v414_v34 }
  0xc9   : > { %v417_v36 = vmax.f32 %v415_v35, 0.0 }
  0xcb   : > { %451 = vmatmul.f32.vlgmr.msra.gmra.mxu1 %v417_v36 }
 0x148   : > { %v452_v38 = vpop.f32.mrf.mxu1 }
 0x149   : > { %v465_v39 = vadd.f32 %v739_v37, %v452_v38 }
 0x14b   : > { %v466_v40 = vadd.f32 %v465_v39, %v376_v29 }
 0x14d   : > { %467 = vadd.xlane.f32.xlu0 %v466_v40 }
 0x1c0   : > { %v468_v43 = vpop.xlane.xlu0 %467 }
 0x1c1   : > { %v469_v44 = vmul.f32 0.03125, %v468_v43 }
 0x1c3   : > { %v470_v47 = vsub.f32 %v466_v40, %v469_v44 }
 0x1c5   : > { %v476_v48 = vmul.f32 %v647_v46, %v470_v47 }
 0x1c7   : > { %v477_v49 = vmul.f32 %v476_v48, %v476_v48 }
 0x1c9   : > { %478 = vadd.xlane.f32.xlu0 %v477_v49 }
 0x23c   : > { %v479_v50 = vpop.xlane.xlu0 %478 }
 0x23d   : > { %v480_v51 = vmul.f32 0.03125, %v479_v50 }
 0x23f   : > { %v481_v52 = vadd.f32 1e-05, %v480_v51 }
 0x241   : > { %742 = vrsqrt.f32 %v481_v52  ;;  %vm488_vm2 = vweird.f32 %v481_v52 }
 0x247   : > { %v743_v53 = vpop.eup %742 }
 0x248   : > { %v483_v54 = vmul.f32 %v743_v53, %v481_v52  ;;  %vm489_vm1 = vweird.f32 %v743_v53 }
 0x249   : > { %vm490_vm3 = vmor %vm488_vm2, %vm489_vm1 }
 0x24a   : > { %v484_v55 = vmul.f32 %v743_v53, %v483_v54 }
 0x24c   : > { %v485_v56 = vmul.f32 0.5, %v484_v55 }
 0x24e   : > { %v486_v57 = vsub.f32 1.5, %v485_v56 }
 0x250   : > { %v487_v58 = vmul.f32 %v743_v53, %v486_v57 }
 0x252   : > { %v491_v60 = vsel %vm490_vm3, %v743_v53, %v487_v58 }
 0x253   : > { %v492_v61 = vmul.f32 %v491_v60, %v476_v48 }
 0x255   : > { %v497_v63 = vmul.f32 %v740_v59, %v492_v61 }
 0x257   : > { %v502_v0 = vadd.f32 %v741_v62, %v497_v63 }
 0x259   : > { %503 = vst [vmem:[%s366_s27] sm:$0xff] %v502_v0 }
 0x25a   : > { %861 = shalt.err (!%p858_p13)
}
 0x25b   : > { %662 = dma.vmem_to_hbm [thread:$0]  (%p1041_p0), %s518_s1, 128, %s520_s8, %s505_s12  }
 0x25c PF: > { %s531_s9 = sand.u32 1, %s900_s24   ;;  %p676_p2 = pnand %p639_p6, %p1048_p5 }
 0x25d   : > { %s532_s23 = scalar_lea.sflag [#allocation5], %s531_s9 }
 0x25e   : > { %p677_p4 = pneg %p676_p2 }
 0x260   : > { %895 = dma.done.wait (%p677_p4), %s532_s23, 128  }
 0x261   : > { %897 = vsyncadd (%p677_p4), %s532_s23, 4294967168  ;;  %s24_s29 = sadd.s32 1, %s920_s29   ;;  %s1145_s24 = smov %s904_s25 }
 0x262   : > { %p21_p7 = scmp.ge.s32.totalorder %s24_s29, 4   ;;  %s1146_s25 = smov %s908_s26 }
 0x263   : > { %s1147_s26 = smov %s1046_s14  ;;  %s1148_s27 = smov %s916_s28 }
 0x264   : > { %s1149_s28 = smov %s1151_s22  ;;  %23 = sbr.rel (!%p21_p7) target bundleno = 9 (0x9), region = 114 }
 0x269   :  { %538 = vsyncpa [#allocation4], 1 }
 0x26a   :  { %540 = vsyncpa [#allocation4 + $0x1], 1 }
 0x26b   :  { %541 = vsyncpa [#allocation7], 1 }
 0x26c   :  { %542 = vsyncpa [#allocation5], 1 }
 0x26d   :  { %544 = vsyncpa [#allocation5 + $0x1], 1 }

// kernel: tpu_custom_call.1
= control target key start
LH: loop header
LB: loop body
LE: loop exit
PB: predicated region body
PF: predicated region fallthrough
CT: control target
= control target key end

     0   :  { %s1130_s0 = inlined_call_operand.hbm [shape: f32[16,128], index: 0, kind: input, shape index: {}]   ;;  %s1131_s1 = inlined_call_operand.hbm [shape: f32[128,128], index: 1, kind: input, shape index: {}]   ;;  %s1132_s2 = inlined_call_operand.vmem [shape: f32[1,128], index: 2, kind: input, shape index: {}]   ;;  %s1133_s3 = inlined_call_operand.hbm [shape: f32[128,128], index: 3, kind: input, shape index: {}]   ;;  %s1134_s4 = inlined_call_operand.vmem [shape: f32[1,128], index: 4, kind: input, shape index: {}]   ;;  %s1135_s5 = inlined_call_operand.vmem [shape: f32[1,128], index: 5, kind: input, shape index: {}]   ;;  %s1136_s6 = inlined_call_operand.vmem [shape: f32[1,128], index: 6, kind: input, shape index: {}]   ;;  %s1137_s7 = inlined_call_operand.hbm [shape: f32[16,128], index: 7, kind: output, shape index: {}]  }
   0x1   :  { %1138 = sst [smem:[#allocation13_spill]] %s1131_s1 }
   0x2   :  { %12 = vsyncpa [#allocation4], 0 }
   0x3   :  { %14 = vsyncpa [#allocation4 + $0x1], 0 }
   0x4   :  { %15 = vsyncpa [#allocation7], 0 }
   0x5   :  { %16 = vsyncpa [#allocation5], 0 }
   0x6   :  { %18 = vsyncpa [#allocation5 + $0x1], 0  ;;  %s967_s24 = smov 0   ;;  %s969_s25 = smov 0  }
   0x7   :  { %s971_s26 = smov 0   ;;  %s973_s27 = smov 0  }
   0x8   :  { %s975_s28 = smov 0   ;;  %s977_s29 = smov 0  }
   0x9 LB: > { %s633_s30 = sadd.s32 4294967295, %s920_s29   ;;  %p635_p0 = scmp.ge.s32.totalorder %s920_s29, 1  ;;  %s920_s29 = sphi %s977_s29, %s24_s29   ;;  %s916_s28 = sphi %s975_s28, %s1149_s28   ;;  %s912_s27 = sphi %s973_s27, %s1148_s27   ;;  %s908_s26 = sphi %s971_s26, %s1147_s26   ;;  %s904_s25 = sphi %s969_s25, %s1146_s25   ;;  %s900_s24 = sphi %s967_s24, %s1145_s24  }
   0xa   : > { %p1001_p1 = scmp.eq.s32.totalorder %s633_s30, 0  ;;  %p234_p2 = scmp.lt.s32.totalorder %s920_s29, 3 }
   0xb   : > { %s1140_s1 = sld [smem:[#allocation13_spill]]  ;;  %s922_s13 = smov [#allocation6]  }
   0xc   : > { %p1009_p3 = pnand %p635_p0, %p234_p2  ;;  %s249_s14 = sshll.u32 %s922_s13, 4  ;;  %s250_s14 = int_to_ptr.vmem [resolvable:$true] %s249_s14 }
   0xd   : > { %p639_p6 = scmp.ge.s32.totalorder %s920_s29, 2  ;;  %s270_s17 = sshll.u32 %s1133_s3, 4  ;;  %s271_s17 = int_to_ptr.hbm [resolvable:$true] %s270_s17 }
   0xe   : > { %p664_p4 = pneg %p1009_p3  ;;  %s923_s18 = smov 128  }
   0xf   : > { %s924_s19 = smov 8   ;;  %s925_s20 = smov [#allocation8]  }
  0x10   : > { %p665_p5 = pnand %p664_p4, %p1001_p1  ;;  %s272_s21 = sshll.u32 %s925_s20, 4  ;;  %s273_s21 = int_to_ptr.vmem [resolvable:$true] %s272_s21 }
  0x11   : > { %s247_s11 = sshll.u32 %s1140_s1, 4  ;;  %s36_s22 = sadd.s32 1, %s916_s28  ;;  %s248_s11 = int_to_ptr.hbm [resolvable:$true] %s247_s11 }
  0x12   : > { %667 = dma.hbm_to_vmem [thread:$0]  (!%p665_p5), %s248_s11, 2048, %s250_s14, [#allocation7], %s923_s18, %s923_s18, %s924_s19  }
  0x13   : > { %670 = dma.hbm_to_vmem [thread:$0]  (!%p665_p5), %s271_s17, 2048, %s273_s21, [#allocation7], %s923_s18, %s923_s18, %s924_s19  }
  0x14   : > { %s634_s23 = sadd.s32 4294967294, %s920_s29   ;;  %p38_p7 = scmp.ge.s32.totalorder %s36_s22, 2 }
  0x15   : > { %s43_s9 = sadd.s32 1, %s908_s26  ;;  %p50_p8 = scmp.ne.s32.totalorder %s908_s26, %s904_s25 }
  0x16   : > { %s1151_s22 = smov (%p38_p7, %s36_s22), 0  ;;  %p51_p9 = scmp.eq.s32.totalorder %s920_s29, 0 }
  0x17   : > { %p56_p10 = scmp.ne.s32.totalorder %s904_s25, %s900_s24  ;;  %s40_s10 = ssub.s32 %s916_s28, %s1151_s22 }
  0x18   : > { %p221_p11 = scmp.eq.s32.totalorder %s633_s30, 1  ;;  %p41_p12 = scmp.eq.s32.totalorder %s40_s10, 0 }
  0x19   : > { %p1037_p13 = por %p1001_p1, %p56_p10  ;;  %p227_p2 = scmp.eq.s32.totalorder %s634_s23, 1 }
  0x1a   : > { %p1041_p0 = por %p221_p11, %p50_p8  ;;  %p52_p4 = por %p51_p9, %p50_p8 }
  0x1b   : > { %s1046_s14 = scalar_select %p41_p12, %s908_s26, %s43_s9  }
  0x1c   : > { %p1048_p5 = por %p227_p2, %p56_p10  ;;  %s295_s16 = sand.u32 1, %s908_s26  }
  0x1d   : > { %s641_s30 = sshll.u32 %s916_s28, 3  ;;  %p681_p7 = scmp.lt.s32.totalorder %s920_s29, 2 }
  0x1e   : > { %s640_s17 = sshll.u32 %s295_s16, 3  ;;  %s303_s20 = scalar_lea.hbm %s1130_s0, %s641_s30 }
  0x1f   : > { %s305_s21 = sshll.u32 %s303_s20, 4  ;;  %s299_s10 = scalar_lea.vmem [#allocation3], %s640_s17  ;;  %s306_s21 = int_to_ptr.hbm [resolvable:$true] %s305_s21 }
  0x20   : > { %s307_s1 = sshll.u32 %s299_s10, 4  ;;  %p672_p11 = pnand %p681_p7, %p52_p4  ;;  %s308_s1 = int_to_ptr.vmem [resolvable:$true] %s307_s1 }
  0x21   : > { %s296_s23 = scalar_lea.sflag [#allocation4], %s295_s16  ;;  %316 = sbr.rel (%p1009_p3) target bundleno = 604 (0x25c), region = 48 }
  0x22   : > { %674 = dma.hbm_to_vmem [thread:$0]  (!%p672_p11), %s306_s21, 128, %s308_s1, %s296_s23  }
  0x23   : > { %s1061_s9 = sand.u32 (!%p1009_p3), 1, %s904_s25  }
  0x24   : > { %s643_s18 = sshll.u32 (!%p1009_p3), %s1061_s9, 3  ;;  %s319_s30 = scalar_lea.sflag (!%p1009_p3), [#allocation4], %s1061_s9 }
  0x25   : > { %s1067_s17 = scalar_lea.vmem (!%p1009_p3), [#allocation3], %s643_s18 }
  0x26   : > { %887 = dma.done.wait (%p1037_p13), %s319_s30, 128  }
  0x27   : > { %889 = vsyncadd (%p1037_p13), %s319_s30, 4294967168 }
  0x28   : > { %891 = dma.done.wait (%p1001_p1), [#allocation7], 4096  }
  0x29   : > { %893 = vsyncadd (%p1001_p1), [#allocation7], 4294963200  ;;  %v392_v0 = vld [vmem:[#allocation6 + $0x78] sm:$0xff]  ;;  %v391_v1 = vld [vmem:[#allocation6 + $0x70] sm:$0xff]  ;;  %v471_v41 = vlaneseq  ;;  %v926_v45 = vmov 0.0   ;;  %s649_s16 = sshll.u32 %s912_s27, 3 }
  0x2a   : > { %397 = vmatpush.msra.mxu0 %v392_v0  ;;  %v390_v2 = vld [vmem:[#allocation6 + $0x68] sm:$0xff]  ;;  %v389_v3 = vld [vmem:[#allocation6 + $0x60] sm:$0xff]  ;;  %v434_v4 = vld [vmem:[#allocation8 + $0x78] sm:$0xff]  ;;  %s515_s23 = scalar_lea.hbm %s1137_s7, %s649_s16  ;;  %s366_s27 = scalar_lea.vmem [#allocation9], %s643_s18 }
  0x2b   : > { %v388_v5 = vld [vmem:[#allocation6 + $0x58] sm:$0xff]  ;;  %435 = vmatpush.msra.mxu1 %v434_v4  ;;  %v433_v6 = vld [vmem:[#allocation8 + $0x70] sm:$0xff]  ;;  %v432_v7 = vld [vmem:[#allocation8 + $0x68] sm:$0xff]  ;;  %v472_v42 = vand.u32 127, %v471_v41  ;;  %s517_s1 = sshll.u32 %s366_s27, 4  ;;  %s519_s8 = sshll.u32 %s515_s23, 4  ;;  %s518_s1 = int_to_ptr.vmem [resolvable:$true] %s517_s1  ;;  %s520_s8 = int_to_ptr.hbm [resolvable:$true] %s519_s8 }
  0x2c   : > { %398 = vmatpush.msra.mxu0 %v391_v1  ;;  %v387_v8 = vld [vmem:[#allocation6 + $0x50] sm:$0xff]  ;;  %v431_v9 = vld [vmem:[#allocation8 + $0x60] sm:$0xff]  ;;  %v386_v10 = vld [vmem:[#allocation6 + $0x48] sm:$0xff]  ;;  %s505_s12 = scalar_lea.sflag [#allocation5], %s1061_s9  ;;  %s848_s11 = sshra.s32 %s520_s8, 4  ;;  %s849_s11 = int_to_ptr.hbm [resolvable:$true] %s848_s11 }
  0x2d   : > { %436 = vmatpush.msra.mxu1 %v433_v6  ;;  %v430_v11 = vld [vmem:[#allocation8 + $0x58] sm:$0xff]  ;;  %v385_v12 = vld [vmem:[#allocation6 + $0x40] sm:$0xff]  ;;  %v429_v13 = vld [vmem:[#allocation8 + $0x50] sm:$0xff]  ;;  %vm473_vm0 = vcmp.lt.s32.totalorder %v472_v42, 32  ;;  %s850_s16 = scalar_lea.hbm %s849_s11, 8  ;;  %s854_s21 = scalar_lea.hbm %s1137_s7, 16 }
  0x2e   : > { %399 = vmatpush.msra.mxu0 %v390_v2  ;;  %v384_v14 = vld [vmem:[#allocation6 + $0x38] sm:$0xff]  ;;  %v428_v15 = vld [vmem:[#allocation8 + $0x48] sm:$0xff]  ;;  %v383_v16 = vld [vmem:[#allocation6 + $0x30] sm:$0xff]  ;;  %v647_v46 = vsel %vm473_vm0, 1.0, %v926_v45  ;;  %p851_p1 = scmp.ne.s32.totalorder %s849_s11, %s850_s16  ;;  %p855_p9 = scmp.lt.s32.totalorder %s849_s11, %s1137_s7 }
  0x2f   : > { %437 = vmatpush.msra.mxu1 %v432_v7  ;;  %v427_v17 = vld [vmem:[#allocation8 + $0x40] sm:$0xff]  ;;  %v382_v18 = vld [vmem:[#allocation6 + $0x28] sm:$0xff]  ;;  %v426_v19 = vld [vmem:[#allocation8 + $0x38] sm:$0xff]  ;;  %p856_p10 = scmp.lt.s32.totalorder %s854_s21, %s850_s16 }
  0x30   : > { %400 = vmatpush.msra.mxu0 %v389_v3  ;;  %v381_v20 = vld [vmem:[#allocation6 + $0x20] sm:$0xff]  ;;  %v425_v21 = vld [vmem:[#allocation8 + $0x30] sm:$0xff]  ;;  %v380_v22 = vld [vmem:[#allocation6 + $0x18] sm:$0xff]  ;;  %p852_p3 = pnand %p851_p1, %p1041_p0 }
  0x31   : > { %438 = vmatpush.msra.mxu1 %v431_v9  ;;  %v424_v23 = vld [vmem:[#allocation8 + $0x28] sm:$0xff]  ;;  %v379_v24 = vld [vmem:[#allocation6 + $0x10] sm:$0xff]  ;;  %v423_v25 = vld [vmem:[#allocation8 + $0x20] sm:$0xff]  ;;  %p857_p12 = por %p856_p10, %p855_p9 }
  0x32   : > { %401 = vmatpush.msra.mxu0 %v388_v5  ;;  %v378_v26 = vld [vmem:[#allocation6 + $0x8] sm:$0xff]  ;;  %v422_v27 = vld [vmem:[#allocation8 + $0x18] sm:$0xff]  ;;  %v377_v28 = vld [vmem:[#allocation6] sm:$0xff]  ;;  %p853_p8 = pneg %p852_p3 }
  0x33   : > { %439 = vmatpush.msra.mxu1 %v430_v11  ;;  %v376_v29 = vld [vmem:[%s1067_s17] sm:$0xff]  ;;  %v420_v31 = vld [vmem:[#allocation8 + $0x8] sm:$0xff]  ;;  %v419_v32 = vld [vmem:[#allocation8] sm:$0xff] }
  0x34   : > { %402 = vmatpush.msra.mxu0 %v387_v8  ;;  %v421_v30 = vld [vmem:[#allocation8 + $0x10] sm:$0xff]  ;;  %p858_p13 = pnand %p857_p12, %p853_p8 }
  0x35   : > { %440 = vmatpush.msra.mxu1 %v429_v13  ;;  %v738_v33 = vld [vmem:[%s1132_s2] ss:$0 sm:$0xff] }
  0x36   : > { %403 = vmatpush.msra.mxu0 %v386_v10  ;;  %v739_v37 = vld [vmem:[%s1134_s4] ss:$0 sm:$0xff] }
  0x37   : > { %441 = vmatpush.msra.mxu1 %v428_v15  ;;  %v740_v59 = vld [vmem:[%s1135_s5] ss:$0 sm:$0xff] }
  0x38   : > { %404 = vmatpush.msra.mxu0 %v385_v12  ;;  %v741_v62 = vld [vmem:[%s1136_s6] ss:$0 sm:$0xff] }
  0x39   : > { %442 = vmatpush.msra.mxu1 %v427_v17 }
  0x3a   : > { %405 = vmatpush.msra.mxu0 %v384_v14 }
  0x3b   : > { %443 = vmatpush.msra.mxu1 %v426_v19 }
  0x3c   : > { %406 = vmatpush.msra.mxu0 %v383_v16 }
  0x3d   : > { %444 = vmatpush.msra.mxu1 %v425_v21 }
  0x3e   : > { %407 = vmatpush.msra.mxu0 %v382_v18 }
  0x3f   : > { %445 = vmatpush.msra.mxu1 %v424_v23 }
  0x40   : > { %408 = vmatpush.msra.mxu0 %v381_v20 }
  0x41   : > { %446 = vmatpush.msra.mxu1 %v423_v25 }
  0x42   : > { %409 = vmatpush.msra.mxu0 %v380_v22 }
  0x43   : > { %447 = vmatpush.msra.mxu1 %v422_v27 }
  0x44   : > { %410 = vmatpush.msra.mxu0 %v379_v24 }
  0x45   : > { %448 = vmatpush.msra.mxu1 %v421_v30 }
  0x46   : > { %411 = vmatpush.msra.mxu0 %v378_v26 }
  0x47   : > { %449 = vmatpush.msra.mxu1 %v420_v31 }
  0x48   : > { %412 = vmatpush.msra.mxu0 %v377_v28 }
  0x49   : > { %413 = vmatmul.f32.vlgmr.msra.gmra.mxu0 %v376_v29  ;;  %450 = vmatpush.msra.mxu1 %v419_v32 }
  0xc6   : > { %v414_v34 = vpop.f32.mrf.mxu0 }
  0xc7   : > { %v415_v35 = vadd.f32 %v738_v33, %v414_v34 }
  0xc9   : > { %v417_v36 = vmax.f32 %v415_v35, 0.0 }
  0xcb   : > { %451 = vmatmul.f32.vlgmr.msra.gmra.mxu1 %v417_v36 }
 0x148   : > { %v452_v38 = vpop.f32.mrf.mxu1 }
 0x149   : > { %v465_v39 = vadd.f32 %v739_v37, %v452_v38 }
 0x14b   : > { %v466_v40 = vadd.f32 %v465_v39, %v376_v29 }
 0x14d   : > { %467 = vadd.xlane.f32.xlu0 %v466_v40 }
 0x1c0   : > { %v468_v43 = vpop.xlane.xlu0 %467 }
 0x1c1   : > { %v469_v44 = vmul.f32 0.03125, %v468_v43 }
 0x1c3   : > { %v470_v47 = vsub.f32 %v466_v40, %v469_v44 }
 0x1c5   : > { %v476_v48 = vmul.f32 %v647_v46, %v470_v47 }
 0x1c7   : > { %v477_v49 = vmul.f32 %v476_v48, %v476_v48 }
 0x1c9   : > { %478 = vadd.xlane.f32.xlu0 %v477_v49 }
 0x23c   : > { %v479_v50 = vpop.xlane.xlu0 %478 }
 0x23d   : > { %v480_v51 = vmul.f32 0.03125, %v479_v50 }
 0x23f   : > { %v481_v52 = vadd.f32 1e-05, %v480_v51 }
 0x241   : > { %742 = vrsqrt.f32 %v481_v52  ;;  %vm488_vm2 = vweird.f32 %v481_v52 }
 0x247   : > { %v743_v53 = vpop.eup %742 }
 0x248   : > { %v483_v54 = vmul.f32 %v743_v53, %v481_v52  ;;  %vm489_vm1 = vweird.f32 %v743_v53 }
 0x249   : > { %vm490_vm3 = vmor %vm488_vm2, %vm489_vm1 }
 0x24a   : > { %v484_v55 = vmul.f32 %v743_v53, %v483_v54 }
 0x24c   : > { %v485_v56 = vmul.f32 0.5, %v484_v55 }
 0x24e   : > { %v486_v57 = vsub.f32 1.5, %v485_v56 }
 0x250   : > { %v487_v58 = vmul.f32 %v743_v53, %v486_v57 }
 0x252   : > { %v491_v60 = vsel %vm490_vm3, %v743_v53, %v487_v58 }
 0x253   : > { %v492_v61 = vmul.f32 %v491_v60, %v476_v48 }
 0x255   : > { %v497_v63 = vmul.f32 %v740_v59, %v492_v61 }
 0x257   : > { %v502_v0 = vadd.f32 %v741_v62, %v497_v63 }
 0x259   : > { %503 = vst [vmem:[%s366_s27] sm:$0xff] %v502_v0 }
 0x25a   : > { %861 = shalt.err (!%p858_p13)
}
 0x25b   : > { %662 = dma.vmem_to_hbm [thread:$0]  (%p1041_p0), %s518_s1, 128, %s520_s8, %s505_s12  }
 0x25c PF: > { %s531_s9 = sand.u32 1, %s900_s24   ;;  %p676_p2 = pnand %p639_p6, %p1048_p5 }
 0x25d   : > { %s532_s23 = scalar_lea.sflag [#allocation5], %s531_s9 }
 0x25e   : > { %p677_p4 = pneg %p676_p2 }
 0x260   : > { %895 = dma.done.wait (%p677_p4), %s532_s23, 128  }
 0x261   : > { %897 = vsyncadd (%p677_p4), %s532_s23, 4294967168  ;;  %s24_s29 = sadd.s32 1, %s920_s29   ;;  %s1145_s24 = smov %s904_s25 }
 0x262   : > { %p21_p7 = scmp.ge.s32.totalorder %s24_s29, 4   ;;  %s1146_s25 = smov %s908_s26 }
 0x263   : > { %s1147_s26 = smov %s1046_s14  ;;  %s1148_s27 = smov %s916_s28 }
 0x264   : > { %s1149_s28 = smov %s1151_s22  ;;  %23 = sbr.rel (!%p21_p7) target bundleno = 9 (0x9), region = 114 }
 0x269   :  { %538 = vsyncpa [#allocation4], 1 }
 0x26a   :  { %540 = vsyncpa [#allocation4 + $0x1], 1 }
 0x26b   :  { %541 = vsyncpa [#allocation7], 1 }
 0x26c   :  { %542 = vsyncpa [#allocation5], 1 }
 0x26d   :  { %544 = vsyncpa [#allocation5 + $0x1], 1 }

</bundles_post_ra>
